<compile_context>
chip_gen: v6e
topology: v6e:2x2x1
jax: 0.10.0
libtpu: 0.0.40
codegen_flags: <defaults>
</compile_context>

<pallas_src>
import jax
import jax.numpy as jnp
from jax.experimental import pallas as pl
from jax.experimental.pallas import tpu as pltpu


# ---------------------------------------------------------------------------
# Helpers
# ---------------------------------------------------------------------------

def _round_up(v, m):
    return ((v + m - 1) // m) * m


def _sublane_pack(dtype):
    """Sublane packing factor: 8 for 32-bit, 16 for 16-bit, 32 for 8-bit."""
    bits = jnp.dtype(dtype).itemsize * 8
    return max(8, 256 // bits)


def _pick_feature_tile(dim, cap):
    """Largest divisor of `dim` <= cap, preferring multiples of 256 (v6e/v7x
    MXU tile), falling back to multiples of 128.  Requires dim % 128 == 0."""
    cap = min(dim, cap)
    for unit in (256, 128):
        t = cap - cap % unit
        while t >= unit:
            if dim % t == 0:
                return t
            t -= unit
    return dim


def _vmem_budget_bytes():
    """~75% of physical VMEM (48 MiB on v7x, 96 MiB on v5e/v6e)."""
    try:
        cap = pltpu.get_tpu_info().vmem_capacity_bytes
    except Exception:
        cap = 64 * 1024 * 1024  # v7x (smallest generation) fallback
    return int(cap * 3 // 4)


# ---------------------------------------------------------------------------
# Kernels
# ---------------------------------------------------------------------------

def _linear_ws_kernel(x_ref, w_ref, b_ref, o_ref):
    """Weight-stationary: full K and M per row block, bias fused in store."""
    x = x_ref[...].astype(jnp.bfloat16)
    acc = jnp.dot(x, w_ref[...], preferred_element_type=jnp.float32)
    o_ref[...] = (acc + b_ref[...]).astype(o_ref.dtype)


def _linear_tiled_kernel(x_ref, w_ref, b_ref, o_ref, acc_ref):
    """General tiled path: (i, j, k) grid, f32 accumulator, bias at k == 0."""
    k = pl.program_id(2)

    @pl.when(k == 0)
    def _():
        acc_ref[...] = jnp.broadcast_to(b_ref[...], acc_ref.shape)

    x = x_ref[...].astype(jnp.bfloat16)
    acc_ref[...] += jnp.dot(x, w_ref[...], preferred_element_type=jnp.float32)

    @pl.when(k == pl.num_programs(2) - 1)
    def _():
        o_ref[...] = acc_ref[...].astype(o_ref.dtype)


# ---------------------------------------------------------------------------
# Inner Pallas module: Linear (y = x @ W + b)
# ---------------------------------------------------------------------------

class PallasLinear:
    """x @ W + b as a tiled Pallas TPU kernel.  x: (N, K) -> (N, M)."""

    # Weight-stationary path is taken when the bf16 weight fits in <= 8 MiB.
    _WS_WEIGHT_BYTES = 8 * 1024 * 1024

    def __init__(self, weight, bias, *, row_tile=1024, force_tiled=False):
        # Cast W to bf16 once (halves HBM/VMEM traffic, native MXU rate on
        # v6e/v7x).  Bias stays f32 and is added to the f32 accumulator.
        self.weight = weight.astype(jnp.bfloat16)      # (K, M)
        self.bias = bias.astype(jnp.float32).reshape(1, -1)  # (1, M) lane-dense
        self.row_tile = int(row_tile)
        self.force_tiled = force_tiled

    def __call__(self, x):
        n, k = x.shape
        k_w, m = self.weight.shape
        assert k == k_w
        # Lane-dense feature dims keep every vector load/store unmasked.
        # TODO(synk): pad K/M up to a multiple of 128 for arbitrary widths.
        assert k % 128 == 0 and m % 128 == 0

        budget = _vmem_budget_bytes()
        x_bytes = jnp.dtype(x.dtype).itemsize
        o_bytes = x_bytes
        w_bytes = jnp.dtype(self.weight.dtype).itemsize
        w_total = k * m * w_bytes

        # Row tile: multiple of the I/O dtype's sublane packing, capped by
        # the user-supplied row_tile and by the (rounded-up) row count.
        sub = _sublane_pack(x.dtype)
        tr_cap = max(sub, self.row_tile - self.row_tile % sub)
        tr = min(tr_cap, _round_up(n, sub))

        ws_ok = (not self.force_tiled) and (w_total <= self._WS_WEIGHT_BYTES)

        if ws_ok:
            # ---------------- weight-stationary fast path ----------------
            def vmem_use(t):
                # double-buffered x/out row blocks + (deduped but
                # double-buffered) W + bias
                return (2 * t * k * x_bytes + 2 * t * m * o_bytes
                        + 2 * w_total + 2 * m * 4)

            while tr > sub and vmem_use(tr) > budget:
                tr -= sub

            grid = (pl.cdiv(n, tr),)
            cost = pl.CostEstimate(
                flops=2 * n * k * m,
                transcendentals=0,
                bytes_accessed=n * k * x_bytes + w_total + m * 4
                               + n * m * o_bytes,
            )
            return pl.pallas_call(
                _linear_ws_kernel,
                out_shape=jax.ShapeDtypeStruct((n, m), x.dtype),
                grid_spec=pltpu.PrefetchScalarGridSpec(
                    num_scalar_prefetch=0,
                    grid=grid,
                    in_specs=[
                        pl.BlockSpec((tr, k), lambda i: (i, 0)),
                        # Constant block index -> DMA deduped, W fetched once.
                        pl.BlockSpec((k, m), lambda i: (0, 0)),
                        pl.BlockSpec((1, m), lambda i: (0, 0)),
                    ],
                    out_specs=pl.BlockSpec((tr, m), lambda i: (i, 0)),
                ),
                compiler_params=pltpu.CompilerParams(
                    dimension_semantics=("parallel",),
                    vmem_limit_bytes=budget,
                ),
                cost_estimate=cost,
            )(x, self.weight, self.bias)

        # -------------------- general tiled fallback --------------------
        tk = _pick_feature_tile(k, 1024)
        tm = _pick_feature_tile(m, 1024)

        def vmem_use(t):
            # double-buffered x/W/out tiles + f32 accumulator + bias
            return (2 * t * tk * x_bytes + 2 * tk * tm * w_bytes
                    + 2 * t * tm * o_bytes + t * tm * 4 + 2 * tm * 4)

        while tr > sub and vmem_use(tr) > budget:
            tr -= sub

        grid = (pl.cdiv(n, tr), m // tm, k // tk)
        cost = pl.CostEstimate(
            flops=2 * n * k * m,
            transcendentals=0,
            bytes_accessed=(n * k * x_bytes) * (m // tm)
                           + w_total * grid[0]
                           + n * m * o_bytes + m * 4,
        )
        return pl.pallas_call(
            _linear_tiled_kernel,
            out_shape=jax.ShapeDtypeStruct((n, m), x.dtype),
            grid_spec=pltpu.PrefetchScalarGridSpec(
                num_scalar_prefetch=0,
                grid=grid,
                in_specs=[
                    pl.BlockSpec((tr, tk), lambda i, j, kk: (i, kk)),
                    pl.BlockSpec((tk, tm), lambda i, j, kk: (kk, j)),
                    pl.BlockSpec((1, tm), lambda i, j, kk: (0, j)),
                ],
                out_specs=pl.BlockSpec((tr, tm), lambda i, j, kk: (i, j)),
                scratch_shapes=[pltpu.VMEM((tr, tm), jnp.float32)],
            ),
            compiler_params=pltpu.CompilerParams(
                # Row/col blocks are independent -> shard across both
                # TensorCores on v7x; the K (reduction) axis stays arbitrary.
                dimension_semantics=("parallel", "parallel", "arbitrary"),
                vmem_limit_bytes=budget,
            ),
            cost_estimate=cost,
        )(x, self.weight, self.bias)


# ---------------------------------------------------------------------------
# TimeDistributed wrapper (forward-pass semantics of the PyTorch module).
# ---------------------------------------------------------------------------

class PallasTimeDistributed:
    """Fold (batch, seq) -> one leading dim, run the wrapped Pallas module on
    the flattened view, then unfold the output, exactly like the PyTorch
    TimeDistributed.forward."""

    def __init__(self, module):
        self.module = module

    def __call__(self, input):
        is_list = isinstance(input, (list, tuple))
        shape = input[0].shape if is_list else input.shape
        bs, seq_len = shape[0], shape[1]
        if is_list:
            flat = [x.reshape((-1,) + x.shape[2:]) for x in input]
        else:
            flat = input.reshape((-1,) + input.shape[2:])
        out = self.module(flat)
        return out.reshape((bs, seq_len) + out.shape[1:])


if __name__ == "__main__":
    key = jax.random.PRNGKey(0)
    k_x, k_w, k_b = jax.random.split(key, 3)

    # Small shapes; feature dims chosen lane-dense (multiple of 128).
    bs, seq_len, in_f, out_f = 2, 8, 128, 256
    x = jax.random.normal(k_x, (bs, seq_len, in_f), dtype=jnp.float32)
    w = jax.random.normal(k_w, (in_f, out_f), dtype=jnp.float32) * 0.05
    b = jax.random.normal(k_b, (out_f,), dtype=jnp.float32)

    # Pure-JAX reference of TimeDistributed(Linear) in f32.
    ref = (x.reshape(-1, in_f) @ w + b).reshape(bs, seq_len, out_f)

    # Weight-stationary fast path (the common TimeDistributed Linear case).
    td = PallasTimeDistributed(PallasLinear(w, b))
    y = jax.block_until_ready(td(x))
    assert y.shape == ref.shape and y.dtype == ref.dtype
    # Tolerance accounts for bf16 inputs on the MXU with f32 accumulation.
    assert jnp.allclose(y, ref, atol=5e-2, rtol=5e-2)

    # General tiled fallback path (exercised explicitly for coverage).
    td_tiled = PallasTimeDistributed(PallasLinear(w, b, force_tiled=True))
    y2 = jax.block_until_ready(td_tiled(x))
    assert y2.shape == ref.shape and y2.dtype == ref.dtype
    assert jnp.allclose(y2, ref, atol=5e-2, rtol=5e-2)

    print("KERNEL_OK")
</pallas_src>

<mosaic_0001>
module attributes {stable_mosaic.version = 11 : i64} {
  func.func @_linear_ws_kernel(%arg0: i32, %arg1: memref<16x128xf32, #tpu.memory_space<vmem>>, %arg2: memref<128x256xbf16, #tpu.memory_space<vmem>>, %arg3: memref<1x256xf32, #tpu.memory_space<vmem>>, %arg4: memref<16x256xf32, #tpu.memory_space<vmem>>) attributes {dimension_semantics = [#tpu.dimension_semantics<parallel>], iteration_bounds = array<i64: 1>, scalar_prefetch = 0 : i64, scratch_operands = 0 : i64, tpu.core_type = #tpu.core_type<tc>, window_params = [{transform_indices = @transform_0, window_bounds = array<i64: 16, 128>}, {pipeline_mode = #tpu.pipeline_mode<synchronous>, transform_indices = @transform_1, window_bounds = array<i64: 128, 256>}, {pipeline_mode = #tpu.pipeline_mode<synchronous>, transform_indices = @transform_2, window_bounds = array<i64: 1, 256>}, {transform_indices = @transform_3, window_bounds = array<i64: 16, 256>}]} {
    %c0 = arith.constant 0 : index
    %c0_0 = arith.constant 0 : index
    %0 = vector.load %arg1[%c0, %c0_0] : memref<16x128xf32, #tpu.memory_space<vmem>>, vector<16x128xf32>
    %1 = arith.truncf %0 : vector<16x128xf32> to vector<16x128xbf16>
    %c0_1 = arith.constant 0 : index
    %c0_2 = arith.constant 0 : index
    %2 = vector.load %arg2[%c0_1, %c0_2] : memref<128x256xbf16, #tpu.memory_space<vmem>>, vector<128x256xbf16>
    %cst = arith.constant dense<0.000000e+00> : vector<16x256xf32>
    %3 = tpu.matmul %1, %2, %cst {dimension_numbers = #tpu.dot_dimension_numbers<[1], [0], [0], [1], [0, 0, 1, 1], [], []>} : vector<16x128xbf16>, vector<128x256xbf16>, vector<16x256xf32> -> vector<16x256xf32>
    %c0_3 = arith.constant 0 : index
    %c0_4 = arith.constant 0 : index
    %4 = vector.load %arg3[%c0_3, %c0_4] : memref<1x256xf32, #tpu.memory_space<vmem>>, vector<1x256xf32>
    %5 = vector.broadcast %4 : vector<1x256xf32> to vector<16x256xf32>
    %6 = arith.addf %3, %5 : vector<16x256xf32>
    %c0_5 = arith.constant 0 : index
    %c0_6 = arith.constant 0 : index
    %7 = vector.load %arg4[%c0_5, %c0_6] : memref<16x256xf32, #tpu.memory_space<vmem>>, vector<16x256xf32>
    tpu.vector_store %arg4[%c0_5, %c0_6], %6 {strides = array<i32>} : memref<16x256xf32, #tpu.memory_space<vmem>>, vector<16x256xf32>,
    return
  }
  func.func @transform_0(%arg0: i32) -> (i32, i32) {
    %c0_i32 = arith.constant 0 : i32
    %c0_i32_0 = arith.constant 0 : i32
    return %arg0, %c0_i32 : i32, i32
  }
  func.func @transform_1(%arg0: i32) -> (i32, i32) {
    %c0_i32 = arith.constant 0 : i32
    %c0_i32_0 = arith.constant 0 : i32
    %c0_i32_1 = arith.constant 0 : i32
    return %c0_i32, %c0_i32_0 : i32, i32
  }
  func.func @transform_2(%arg0: i32) -> (i32, i32) {
    %c0_i32 = arith.constant 0 : i32
    %c0_i32_0 = arith.constant 0 : i32
    %c0_i32_1 = arith.constant 0 : i32
    return %c0_i32, %c0_i32_0 : i32, i32
  }
  func.func @transform_3(%arg0: i32) -> (i32, i32) {
    %c0_i32 = arith.constant 0 : i32
    %c0_i32_0 = arith.constant 0 : i32
    return %arg0, %c0_i32 : i32, i32
  }
}

</mosaic_0001>

<bundles_post_ra>
// kernel: tpu_custom_call.1
= control target key start
LH: loop header
LB: loop body
LE: loop exit
PB: predicated region body
PF: predicated region fallthrough
CT: control target
= control target key end

     0   :  { %8 = vsyncpa [#allocation3], 0  ;;  %s374_s0 = inlined_call_operand.hbm [shape: f32[16,128], index: 0, kind: input, shape index: {}]   ;;  %s375_s1 = inlined_call_operand.hbm [shape: bf16[128,256], index: 1, kind: input, shape index: {}]   ;;  %s376_s2 = inlined_call_operand.vmem [shape: f32[1,256], index: 2, kind: input, shape index: {}]   ;;  %s377_s3 = inlined_call_operand.hbm [shape: f32[16,256], index: 3, kind: output, shape index: {}]  }
   0x1   :  { %9 = vsyncpa [#allocation6], 0 }
   0x2   :  { %10 = vsyncpa [#allocation4], 0  ;;  %s334_s12 = smov [#allocation2]  }
   0x3   :  { %s16_s13 = sshll.u32 %s334_s12, 4  ;;  %s17_s13 = int_to_ptr.vmem [resolvable:$true] %s16_s13 }
   0x4   :  { %s276_s14 = scalar_lea.vmem %s17_s13, 256  ;;  %p281_p1 = scmp.lt.s32.totalorder %s17_s13, %s17_s13 }
   0x5   :  { %p277_p0 = scmp.ne.s32.totalorder %s17_s13, %s276_s14  ;;  %p282_p2 = scmp.lt.s32.totalorder %s276_s14, %s276_s14 }
   0x7   :  { %p283_p3 = por %p282_p2, %p281_p1 }
   0x9   :  { %p284_p4 = pnand %p283_p3, %p277_p0 }
   0xb   :  { %287 = shalt.err (!%p284_p4)
}
   0xc   :  { %s335_s15 = smov 128   ;;  %s336_s16 = smov 8  }
   0xd   :  { %22 = dma.hbm_to_vmem [thread:$0]  %s374_s0, 256, %s17_s13, [#allocation3], %s335_s15, %s335_s15, %s336_s16  }
   0xe   :  { %s337_s19 = smov [#allocation5]  }
   0xf   :  { %s28_s20 = sshll.u32 %s337_s19, 4  ;;  %s29_s20 = int_to_ptr.vmem [resolvable:$true] %s28_s20 }
  0x10   :  { %s296_s21 = scalar_lea.vmem %s29_s20, 2048  ;;  %p301_p6 = scmp.lt.s32.totalorder %s29_s20, %s29_s20 }
  0x11   :  { %p297_p5 = scmp.ne.s32.totalorder %s29_s20, %s296_s21  ;;  %p302_p7 = scmp.lt.s32.totalorder %s296_s21, %s296_s21 }
  0x13   :  { %p303_p8 = por %p302_p7, %p301_p6 }
  0x15   :  { %p304_p9 = pnand %p303_p8, %p297_p5 }
  0x17   :  { %307 = shalt.err (!%p304_p9)
}
  0x18   :  { %34 = dma.hbm_to_vmem [thread:$0]  %s375_s1, 2048, %s29_s20, [#allocation6], %s335_s15, %s335_s15, %s336_s16  }
  0x19   :  { %328 = dma.done.wait [#allocation3], 256  }
  0x1a   :  { %329 = vsyncadd [#allocation3], 4294967040 }
  0x1b   :  { %330 = dma.done.wait [#allocation6], 2048  }
  0x1c   :  { %331 = vsyncadd [#allocation6], 4294965248  ;;  %v338_v0 = vmov 0   ;;  %v244_v1 = vld [vmem:[#allocation5 + $0x74] ss:$8 sps:$4 sm:$0xff]   ;;  %v65_v20 = vlaneseq  ;;  %s339_s24 = smov [#allocation7]  }
  0x1d   :  { %187 = vmatprep.mubr.bf16.mxu0 %v338_v0  ;;  %v246_v2 = vld [vmem:[#allocation5 + $0x70] ss:$8 sps:$4 sm:$0xff]   ;;  %155 = vmatprep.subr.bf16.mxu0 %v244_v1  ;;  %v247_v3 = vld [vmem:[#allocation5 + $0x64] ss:$8 sps:$4 sm:$0xff]   ;;  %v249_v4 = vld [vmem:[#allocation5 + $0x60] ss:$8 sps:$4 sm:$0xff]  }
  0x1e   :  { %156 = vmatpush1.bf16.msra.mxu0 %v246_v2  ;;  %v250_v5 = vld [vmem:[#allocation5 + $0x54] ss:$8 sps:$4 sm:$0xff]   ;;  %v252_v6 = vld [vmem:[#allocation5 + $0x50] ss:$8 sps:$4 sm:$0xff]   ;;  %v253_v7 = vld [vmem:[#allocation5 + $0x44] ss:$8 sps:$4 sm:$0xff]  }
  0x1f   :  { %157 = vmatprep.subr.bf16.mxu0 %v247_v3  ;;  %v255_v8 = vld [vmem:[#allocation5 + $0x40] ss:$8 sps:$4 sm:$0xff]   ;;  %v256_v9 = vld [vmem:[#allocation5 + $0x34] ss:$8 sps:$4 sm:$0xff]   ;;  %v258_v10 = vld [vmem:[#allocation5 + $0x30] ss:$8 sps:$4 sm:$0xff]  }
  0x20   :  { %v259_v11 = vld [vmem:[#allocation5 + $0x24] ss:$8 sps:$4 sm:$0xff]   ;;  %v261_v12 = vld [vmem:[#allocation5 + $0x20] ss:$8 sps:$4 sm:$0xff]   ;;  %v262_v13 = vld [vmem:[#allocation5 + $0x14] ss:$8 sps:$4 sm:$0xff]  }
  0x21   :  { %v264_v14 = vld [vmem:[#allocation5 + $0x10] ss:$8 sps:$4 sm:$0xff]   ;;  %v265_v15 = vld [vmem:[#allocation5 + $0x4] ss:$8 sps:$4 sm:$0xff]   ;;  %v267_v16 = vld [vmem:[#allocation5] ss:$8 sps:$4 sm:$0xff]  }
  0x22   :  { %158 = vmatpush1.bf16.msra.mxu0 %v249_v4  ;;  %v44_v17 = vld [vmem:[#allocation2] sm:$0xff]  ;;  %v45_v18 = vld [vmem:[#allocation2 + $0x8] sm:$0xff]  ;;  %v66_v21 = vshrl.u32 %v65_v20, 7  ;;  %s207_s25 = sshll.u32 %s339_s24, 4  ;;  %s208_s25 = int_to_ptr.vmem [resolvable:$true] %s207_s25 }
  0x23   :  { %159 = vmatprep.subr.bf16.mxu0 %v250_v5  ;;  %v46_v19 = vpack.c.bf16 %v45_v18, %v44_v17  ;;  %v63_v23 = vld [vmem:[%s376_s2] sm:$0x3]  ;;  %s308_s26 = scalar_lea.vmem %s208_s25, 512  ;;  %p313_p11 = scmp.lt.s32.totalorder %s208_s25, %s208_s25 }
  0x24   :  { %v67_v22 = vsub.s32 0, %v66_v21  ;;  %v71_v24 = vsub.s32 1, %v66_v21  ;;  %p309_p10 = scmp.ne.s32.totalorder %s208_s25, %s308_s26  ;;  %p314_p12 = scmp.lt.s32.totalorder %s308_s26, %s308_s26 }
  0x26   :  { %160 = vmatpush1.bf16.msra.mxu0 %v252_v6  ;;  %v68_v25 = vrot.slane %v63_v23, %v67_v22  ;;  %v72_v26 = vrot.slane %v63_v23, %v71_v24  ;;  %p315_p13 = por %p314_p12, %p313_p11 }
  0x27   :  { %161 = vmatprep.subr.bf16.mxu0 %v253_v7 }
  0x28   :  { %p316_p0 = pnand %p315_p13, %p309_p10 }
  0x2a   :  { %162 = vmatpush1.bf16.msra.mxu0 %v255_v8 }
  0x2b   :  { %163 = vmatprep.subr.bf16.mxu0 %v256_v9 }
  0x2e   :  { %164 = vmatpush1.bf16.msra.mxu0 %v258_v10 }
  0x2f   :  { %165 = vmatprep.subr.bf16.mxu0 %v259_v11 }
  0x32   :  { %166 = vmatpush1.bf16.msra.mxu0 %v261_v12 }
  0x33   :  { %167 = vmatprep.subr.bf16.mxu0 %v262_v13 }
  0x36   :  { %168 = vmatpush1.bf16.msra.mxu0 %v264_v14 }
  0x37   :  { %169 = vmatprep.subr.bf16.mxu0 %v265_v15 }
  0x3a   :  { %170 = vmatpush1.bf16.msra.mxu0 %v267_v16 }
  0x3d   :  { %188 = vmatmul.mubr.bf16.vlgmr.msra.gmra.mxu0 %v46_v19 }
  0xfd   :  { %v189_v27 = vpop.f32.mrf.mxu0 }
  0xfe   :  { %v190_v28 = vadd.f32 %v189_v27, %v68_v25 }
  0xff   :  { %v191_v29 = vpop.f32.mrf.mxu0 }
 0x100   :  { %198 = vst [vmem:[#allocation7] sm:$0xff] %v190_v28  ;;  %v192_v30 = vadd.f32 %v191_v29, %v72_v26 }
 0x101   :  { %v193_v31 = vpop.f32.mrf.mxu0 }
 0x102   :  { %199 = vst [vmem:[#allocation7 + $0x8] sm:$0xff] %v192_v30  ;;  %v194_v32 = vadd.f32 %v193_v31, %v68_v25 }
 0x103   :  { %v195_v33 = vpop.f32.mrf.mxu0 }
 0x104   :  { %200 = vst [vmem:[#allocation7 + $0x10] sm:$0xff] %v194_v32  ;;  %v196_v34 = vadd.f32 %v195_v33, %v72_v26 }
 0x106   :  { %201 = vst [vmem:[#allocation7 + $0x18] sm:$0xff] %v196_v34 }
 0x107   :  { %319 = shalt.err (!%p316_p0)
}
 0x108   :  { %s340_s2 = smov 256   ;;  %s341_s27 = smov 16  }
 0x109   :  { %213 = dma.vmem_to_hbm [thread:$0]  %s208_s25, 512, %s377_s3, [#allocation4], %s340_s2, %s340_s2, %s341_s27  }
 0x10a   :  { %332 = dma.done.wait [#allocation4], 512  }
 0x10b   :  { %333 = vsyncadd [#allocation4], 4294966784 }
 0x10c   :  { %217 = vsyncpa [#allocation3], 1 }
 0x10d   :  { %218 = vsyncpa [#allocation6], 1 }
 0x10e   :  { %219 = vsyncpa [#allocation4], 1 }

</bundles_post_ra>
